<compile_context>
chip_gen: v6e
topology: v6e:2x2x1
jax: 0.10.0
libtpu: 0.0.40
codegen_flags: <defaults>
</compile_context>

<pallas_src>
import math

import jax
import jax.numpy as jnp
from jax.experimental import pallas as pl
from jax.experimental.pallas import tpu as pltpu


# ------------------------------ Pallas kernel --------------------------------
def _timestep_embedding_kernel(x_ref, w1_ref, b1_ref, w2_ref, b2_ref, o_ref):
    """Fused Linear -> SiLU -> Linear on one row tile.

    x_ref : (tm, C)  bf16   streamed per grid step (pipelined)
    w1_ref: (C, D)   bf16   VMEM-resident
    b1_ref: (1, D)   f32    VMEM-resident
    w2_ref: (D, D)   bf16   VMEM-resident
    b2_ref: (1, D)   f32    VMEM-resident
    o_ref : (tm, D)  f32    lane-dense output tile
    """
    # linear_1 : bf16 operands into the MXU, f32 accumulation.
    h = jnp.dot(x_ref[...], w1_ref[...], preferred_element_type=jnp.float32)
    h = h + b1_ref[...]
    # SiLU in f32; the sigmoid's exp/recip go to the EUP slot (free under the
    # MXU/VPU work).
    h = h * jax.nn.sigmoid(h)
    # linear_2 : re-quantize hidden to bf16 for the MXU, accumulate in f32.
    out = jnp.dot(h.astype(jnp.bfloat16), w2_ref[...],
                  preferred_element_type=jnp.float32)
    o_ref[...] = out + b2_ref[...]


# ------------------------------ host wrapper ----------------------------------
def timestep_embedding(sample, params, *, tile_m=128):
    """sample: (M, channel) -> (M, time_embed_dim) f32. Fused MLP forward."""
    M, C = sample.shape
    D = params["l1"]["w"].shape[1]
    assert params["l2"]["w"].shape == (D, D)

    # bf16 MXU operands; biases stay f32 for the accumulator add.
    xb = sample.astype(jnp.bfloat16)
    w1 = params["l1"]["w"].astype(jnp.bfloat16)
    w2 = params["l2"]["w"].astype(jnp.bfloat16)
    b1 = params["l1"]["b"].astype(jnp.float32).reshape(1, D)
    b2 = params["l2"]["b"].astype(jnp.float32).reshape(1, D)

    # Row tiling: 128-row tiles for real batches, 8-row minimum (sublane
    # multiple) for tiny batches. Pad rows up to a tile multiple.
    tm = tile_m if M >= tile_m else max(8, -(-M // 8) * 8)
    Mp = -(-M // tm) * tm
    if Mp != M:
        xb = jnp.pad(xb, ((0, Mp - M), (0, 0)))
    grid = (Mp // tm,)

    # Explicit VMEM budget: double-buffered x/out tiles + resident W1/W2/bias,
    # with 4x headroom and a comfortable floor for compiler-internal scratch.
    vmem_bytes = (2 * tm * C * 2            # x tiles, bf16, double-buffered
                  + C * D * 2 + D * D * 2   # resident weights, bf16
                  + 2 * D * 4               # biases, f32
                  + 2 * tm * D * 4)         # out tiles, f32, double-buffered
    vmem_limit = int(min(max(4 * vmem_bytes, 8 << 20), 64 * 1024 * 1024))

    cost = pl.CostEstimate(
        flops=2 * Mp * C * D + 2 * Mp * D * D,
        transcendentals=Mp * D,
        bytes_accessed=(Mp * C * 2 + C * D * 2 + D * D * 2
                        + 2 * D * 4 + Mp * D * 4),
    )

    out = pl.pallas_call(
        _timestep_embedding_kernel,
        out_shape=jax.ShapeDtypeStruct((Mp, D), jnp.float32),
        grid=grid,
        in_specs=[
            pl.BlockSpec((tm, C), lambda i: (i, 0)),   # x row tile (streamed)
            pl.BlockSpec((C, D), lambda i: (0, 0)),    # W1 (resident)
            pl.BlockSpec((1, D), lambda i: (0, 0)),    # b1 (resident)
            pl.BlockSpec((D, D), lambda i: (0, 0)),    # W2 (resident)
            pl.BlockSpec((1, D), lambda i: (0, 0)),    # b2 (resident)
        ],
        out_specs=pl.BlockSpec((tm, D), lambda i: (i, 0)),
        compiler_params=pltpu.CompilerParams(
            dimension_semantics=("parallel",),
            vmem_limit_bytes=vmem_limit),
        cost_estimate=cost,
    )(xb, w1, b1, w2, b2)
    return out[:M]


# --------------------------- reference & params -------------------------------
def timestep_embedding_ref(sample, params):
    h = sample @ params["l1"]["w"] + params["l1"]["b"]
    h = h * jax.nn.sigmoid(h)
    return h @ params["l2"]["w"] + params["l2"]["b"]


def init_params(key, channel, time_embed_dim):
    def linear(k, din, dout):
        kw, kb = jax.random.split(k)
        bound = 1.0 / math.sqrt(din)
        return {"w": jax.random.uniform(kw, (din, dout), jnp.float32, -bound, bound),
                "b": jax.random.uniform(kb, (dout,), jnp.float32, -bound, bound)}
    k1, k2 = jax.random.split(key)
    return {"l1": linear(k1, channel, time_embed_dim),
            "l2": linear(k2, time_embed_dim, time_embed_dim)}


# ---------------------------------- main --------------------------------------
if __name__ == "__main__":
    CHANNEL = 32          # block_out_channels[0] (scaled-down SD config)
    TIME_EMBED_DIM = 128  # channel * 4
    BATCH = 2

    root = jax.random.PRNGKey(0)
    k_p, k_x, k_x2 = jax.random.split(root, 3)

    params = init_params(k_p, CHANNEL, TIME_EMBED_DIM)
    sample = jax.random.normal(k_x, (BATCH, CHANNEL), jnp.float32)

    fwd = jax.jit(timestep_embedding)

    out = jax.block_until_ready(fwd(sample, params))
    assert out.shape == (BATCH, TIME_EMBED_DIM), out.shape
    assert bool(jnp.all(jnp.isfinite(out)))
    ref = timestep_embedding_ref(sample, params)
    # bf16 MXU operands with f32 accumulation -> loose tolerance vs f32 ref.
    assert bool(jnp.allclose(out, ref, rtol=2e-2, atol=2e-2)), \
        float(jnp.max(jnp.abs(out - ref)))

    # Also exercise the multi-tile grid path (parallel 128-row tiles).
    sample_big = jax.random.normal(k_x2, (256, CHANNEL), jnp.float32)
    out_big = jax.block_until_ready(fwd(sample_big, params))
    ref_big = timestep_embedding_ref(sample_big, params)
    assert out_big.shape == (256, TIME_EMBED_DIM)
    assert bool(jnp.allclose(out_big, ref_big, rtol=2e-2, atol=2e-2))

    print("KERNEL_OK")
</pallas_src>

<mosaic_0001>
module attributes {stable_mosaic.version = 11 : i64} {
  func.func @_timestep_embedding_kernel(%arg0: i32, %arg1: memref<8x32xbf16, #tpu.memory_space<vmem>>, %arg2: memref<32x128xbf16, #tpu.memory_space<vmem>>, %arg3: memref<1x128xf32, #tpu.memory_space<vmem>>, %arg4: memref<128x128xbf16, #tpu.memory_space<vmem>>, %arg5: memref<1x128xf32, #tpu.memory_space<vmem>>, %arg6: memref<8x128xf32, #tpu.memory_space<vmem>>) attributes {dimension_semantics = [#tpu.dimension_semantics<parallel>], iteration_bounds = array<i64: 1>, scalar_prefetch = 0 : i64, scratch_operands = 0 : i64, tpu.core_type = #tpu.core_type<tc>, window_params = [{transform_indices = @transform_0, window_bounds = array<i64: 8, 32>}, {pipeline_mode = #tpu.pipeline_mode<synchronous>, transform_indices = @transform_1, window_bounds = array<i64: 32, 128>}, {pipeline_mode = #tpu.pipeline_mode<synchronous>, transform_indices = @transform_2, window_bounds = array<i64: 1, 128>}, {pipeline_mode = #tpu.pipeline_mode<synchronous>, transform_indices = @transform_3, window_bounds = array<i64: 128, 128>}, {pipeline_mode = #tpu.pipeline_mode<synchronous>, transform_indices = @transform_4, window_bounds = array<i64: 1, 128>}, {transform_indices = @transform_5, window_bounds = array<i64: 8, 128>}]} {
    %c0 = arith.constant 0 : index
    %c0_0 = arith.constant 0 : index
    %0 = vector.load %arg1[%c0, %c0_0] : memref<8x32xbf16, #tpu.memory_space<vmem>>, vector<8x32xbf16>
    %c0_1 = arith.constant 0 : index
    %c0_2 = arith.constant 0 : index
    %1 = vector.load %arg2[%c0_1, %c0_2] : memref<32x128xbf16, #tpu.memory_space<vmem>>, vector<32x128xbf16>
    %cst = arith.constant dense<0.000000e+00> : vector<8x128xf32>
    %2 = tpu.matmul %0, %1, %cst {dimension_numbers = #tpu.dot_dimension_numbers<[1], [0], [0], [1], [0, 0, 1, 1], [], []>} : vector<8x32xbf16>, vector<32x128xbf16>, vector<8x128xf32> -> vector<8x128xf32>
    %c0_3 = arith.constant 0 : index
    %c0_4 = arith.constant 0 : index
    %3 = vector.load %arg3[%c0_3, %c0_4] : memref<1x128xf32, #tpu.memory_space<vmem>>, vector<1x128xf32>
    %4 = vector.broadcast %3 : vector<1x128xf32> to vector<8x128xf32>
    %5 = arith.addf %2, %4 : vector<8x128xf32>
    %6 = arith.negf %5 : vector<8x128xf32>
    %7 = math.exp %6 : vector<8x128xf32>
    %cst_5 = arith.constant 1.000000e+00 : f32
    %8 = vector.broadcast %cst_5 : f32 to vector<8x128xf32>
    %9 = arith.addf %8, %7 : vector<8x128xf32>
    %10 = arith.divf %8, %9 : vector<8x128xf32>
    %11 = arith.mulf %5, %10 : vector<8x128xf32>
    %12 = arith.truncf %11 : vector<8x128xf32> to vector<8x128xbf16>
    %c0_6 = arith.constant 0 : index
    %c0_7 = arith.constant 0 : index
    %13 = vector.load %arg4[%c0_6, %c0_7] : memref<128x128xbf16, #tpu.memory_space<vmem>>, vector<128x128xbf16>
    %cst_8 = arith.constant dense<0.000000e+00> : vector<8x128xf32>
    %14 = tpu.matmul %12, %13, %cst_8 {dimension_numbers = #tpu.dot_dimension_numbers<[1], [0], [0], [1], [0, 0, 1, 1], [], []>} : vector<8x128xbf16>, vector<128x128xbf16>, vector<8x128xf32> -> vector<8x128xf32>
    %c0_9 = arith.constant 0 : index
    %c0_10 = arith.constant 0 : index
    %15 = vector.load %arg5[%c0_9, %c0_10] : memref<1x128xf32, #tpu.memory_space<vmem>>, vector<1x128xf32>
    %16 = vector.broadcast %15 : vector<1x128xf32> to vector<8x128xf32>
    %17 = arith.addf %14, %16 : vector<8x128xf32>
    %c0_11 = arith.constant 0 : index
    %c0_12 = arith.constant 0 : index
    %18 = vector.load %arg6[%c0_11, %c0_12] : memref<8x128xf32, #tpu.memory_space<vmem>>, vector<8x128xf32>
    tpu.vector_store %arg6[%c0_11, %c0_12], %17 {strides = array<i32>} : memref<8x128xf32, #tpu.memory_space<vmem>>, vector<8x128xf32>,
    return
  }
  func.func @transform_0(%arg0: i32) -> (i32, i32) {
    %c0_i32 = arith.constant 0 : i32
    %c0_i32_0 = arith.constant 0 : i32
    return %arg0, %c0_i32 : i32, i32
  }
  func.func @transform_1(%arg0: i32) -> (i32, i32) {
    %c0_i32 = arith.constant 0 : i32
    %c0_i32_0 = arith.constant 0 : i32
    %c0_i32_1 = arith.constant 0 : i32
    return %c0_i32, %c0_i32_0 : i32, i32
  }
  func.func @transform_2(%arg0: i32) -> (i32, i32) {
    %c0_i32 = arith.constant 0 : i32
    %c0_i32_0 = arith.constant 0 : i32
    %c0_i32_1 = arith.constant 0 : i32
    return %c0_i32, %c0_i32_0 : i32, i32
  }
  func.func @transform_3(%arg0: i32) -> (i32, i32) {
    %c0_i32 = arith.constant 0 : i32
    %c0_i32_0 = arith.constant 0 : i32
    %c0_i32_1 = arith.constant 0 : i32
    return %c0_i32, %c0_i32_0 : i32, i32
  }
  func.func @transform_4(%arg0: i32) -> (i32, i32) {
    %c0_i32 = arith.constant 0 : i32
    %c0_i32_0 = arith.constant 0 : i32
    %c0_i32_1 = arith.constant 0 : i32
    return %c0_i32, %c0_i32_0 : i32, i32
  }
  func.func @transform_5(%arg0: i32) -> (i32, i32) {
    %c0_i32 = arith.constant 0 : i32
    %c0_i32_0 = arith.constant 0 : i32
    return %arg0, %c0_i32 : i32, i32
  }
}

</mosaic_0001>

<bundles_post_ra>
// kernel: timestep_embedding.1
= control target key start
LH: loop header
LB: loop body
LE: loop exit
PB: predicated region body
PF: predicated region fallthrough
CT: control target
= control target key end

     0   :  { %v283_v0 = vmov 0.0   ;;  %vm284_vm0 = vmmov 0   ;;  %vm45_vm1 = vcmask 261120   ;;  %s357_s1 = inlined_call_operand.vmem [shape: bf16[32,128], index: 1, kind: input, shape index: {}]   ;;  %s358_s0 = inlined_call_operand.vmem [shape: bf16[8,32], index: 0, kind: input, shape index: {}]   ;;  %s359_s3 = inlined_call_operand.vmem [shape: bf16[128,128], index: 3, kind: input, shape index: {}]   ;;  %s360_s2 = inlined_call_operand.vmem [shape: f32[1,128], index: 2, kind: input, shape index: {}]   ;;  %s361_s4 = inlined_call_operand.vmem [shape: f32[1,128], index: 4, kind: input, shape index: {}]   ;;  %s362_s5 = inlined_call_operand.vmem [shape: f32[8,128], index: 5, kind: output, shape index: {}]  }
   0x1   :  { %239 = vmatprep.subr.bf16.mxu0 %v283_v0  ;;  %v269_v1 = vld [vmem:[%s357_s1 + $0x8] sm:$0xff]   ;;  %243 = vmatprep.mubr.msk.bf16.mxu0 %vm284_vm0, %v283_v0  ;;  %v270_v2 = vld [vmem:[%s357_s1] sm:$0xff]   ;;  %v271_v4 = vld [vmem:[%s359_s3 + $0x38] sm:$0xff]  }
   0x2   :  { %247 = vmatprep.subr.bf16.mxu1 %v283_v0  ;;  %263 = vmatprep.mubr.msk.bf16.mxu1 %vm284_vm0, %v283_v0  ;;  %v21_v3 = vld [vmem:[%s358_s0] sm:$0xf]  ;;  %v272_v5 = vld [vmem:[%s359_s3 + $0x30] sm:$0xff]   ;;  %v273_v6 = vld [vmem:[%s359_s3 + $0x28] sm:$0xff]  }
   0x3   :  { %240 = vmatpush3.bf16.msra.mxu0 %v269_v1  ;;  %248 = vmatpush3.bf16.msra.mxu1 %v271_v4  ;;  %v274_v7 = vld [vmem:[%s359_s3 + $0x20] sm:$0xff]   ;;  %v275_v8 = vld [vmem:[%s359_s3 + $0x18] sm:$0xff]   ;;  %v276_v9 = vld [vmem:[%s359_s3 + $0x10] sm:$0xff]  }
   0x4   :  { %241 = vmatprep.subr.bf16.mxu0 %v283_v0  ;;  %249 = vmatprep.subr.bf16.mxu1 %v283_v0  ;;  %v277_v10 = vld [vmem:[%s359_s3 + $0x8] sm:$0xff]   ;;  %v278_v11 = vld [vmem:[%s359_s3] sm:$0xff]  }
   0x5   :  { %v213_v12 = vld [vmem:[%s360_s2] ss:$0 sm:$0xff] }
   0x6   :  { %v218_v24 = vld [vmem:[%s361_s4] ss:$0 sm:$0xff] }
   0x7   :  { %242 = vmatpush3.bf16.msra.mxu0 %v270_v2  ;;  %250 = vmatpush3.bf16.msra.mxu1 %v272_v5 }
   0x8   :  { %251 = vmatprep.subr.bf16.mxu1 %v283_v0 }
   0xa   :  { %244 = vmatmul.mubr.msk.bf16.vlgmr.msra.gmra.mxu0 %vm45_vm1, %v21_v3 }
   0xb   :  { %252 = vmatpush3.bf16.msra.mxu1 %v273_v6 }
   0xc   :  { %253 = vmatprep.subr.bf16.mxu1 %v283_v0 }
   0xf   :  { %254 = vmatpush3.bf16.msra.mxu1 %v274_v7 }
  0x10   :  { %255 = vmatprep.subr.bf16.mxu1 %v283_v0 }
  0x13   :  { %256 = vmatpush3.bf16.msra.mxu1 %v275_v8 }
  0x14   :  { %257 = vmatprep.subr.bf16.mxu1 %v283_v0 }
  0x17   :  { %258 = vmatpush3.bf16.msra.mxu1 %v276_v9 }
  0x18   :  { %259 = vmatprep.subr.bf16.mxu1 %v283_v0 }
  0x1b   :  { %260 = vmatpush3.bf16.msra.mxu1 %v277_v10 }
  0x1c   :  { %261 = vmatprep.subr.bf16.mxu1 %v283_v0 }
  0x1f   :  { %262 = vmatpush3.bf16.msra.mxu1 %v278_v11 }
  0xca   :  { %v83_v13 = vpop.f32.mrf.mxu0 }
  0xcb   :  { %v84_v14 = vadd.f32 %v213_v12, %v83_v13 }
  0xcc   :  { %v245_v15 = vpop.f32.mrf.mxu0 }
  0xcd   :  { %v217_v16 = vmul.f32 -1.442695, %v84_v14 }
  0xce   :  { %v86_v17 = vpop.f32.mrf.mxu0 }
  0xcf   :  { %279 = vpow2.f32 %v217_v16 }
  0xd0   :  { %v246_v18 = vpop.f32.mrf.mxu0 }
  0xdc   :  { %v280_v19 = vpop.eup %279 }
  0xdd   :  { %v92_v20 = vadd.f32 1.0, %v280_v19 }
  0xdf   :  { %281 = vrcp.f32 %v92_v20 }
  0xec   :  { %v282_v21 = vpop.eup %281 }
  0xed   :  { %v95_v22 = vmul.f32 %v282_v21, %v84_v14 }
  0xef   :  { %v96_v23 = vpack.c.bf16 %v95_v22, %v95_v22 }
  0xf1   :  { %264 = vmatmul.mubr.bf16.vlgmr.msra.gmra.mxu1 %v96_v23 }
 0x1b1   :  { %v202_v25 = vpop.f32.mrf.mxu1 }
 0x1b2   :  { %v203_v26 = vadd.f32 %v218_v24, %v202_v25 }
 0x1b3   :  { %v265_v27 = vpop.f32.mrf.mxu1 }
 0x1b4   :  { %208 = vst [vmem:[%s362_s5] sm:$0xff] %v203_v26 }
 0x1b5   :  { %v205_v28 = vpop.f32.mrf.mxu1 }
 0x1b7   :  { %v266_v29 = vpop.f32.mrf.mxu1 }

</bundles_post_ra>
